<compile_context>
chip_gen: v6e
topology: v6e:2x2x1
jax: 0.10.0
libtpu: 0.0.40
codegen_flags: <defaults>
</compile_context>

<pallas_src>
import functools
import math

import jax
import jax.numpy as jnp
from jax import lax
from jax.experimental import pallas as pl
from jax.experimental.pallas import tpu as pltpu

patch_size = 7
DATA_DIM = patch_size * patch_size * 3   # 147
DIM_Q = 4


def _self_attention_kernel(x_ref, w_ref, o_ref, *, B, T, dim_q):
    # x_ref: (B*T, K+1)        flattened rows with a trailing ones column
    # w_ref: (K+1, 2*dim_q)    [Wq^T*scale | Wk^T] with [bq*scale | bk] as last row
    # o_ref: (B*T, T)          per-batch scaled score blocks, stacked along rows
    qk = jnp.dot(x_ref[...], w_ref[...], preferred_element_type=jnp.float32)
    q = qk[:, :dim_q]          # (B*T, dim_q), scale already folded in
    k = qk[:, dim_q:]          # (B*T, dim_q)

    # Single MXU push: Gram matrix over all rows. Off-diagonal blocks are
    # cross-batch garbage and are simply not written out.
    s = lax.dot_general(q, k, (((1,), (1,)), ((), ())),
                        preferred_element_type=jnp.float32)   # (B*T, B*T)

    # B, T are tiny and static: write only the diagonal (T, T) blocks.
    for b in range(B):
        o_ref[b * T:(b + 1) * T, :] = s[b * T:(b + 1) * T, b * T:(b + 1) * T]


@jax.jit
def self_attention(x, w_q, b_q, w_k, b_k):
    """x: (B, T, K) float32. w_*: (dim_q, K) (PyTorch Linear layout). b_*: (dim_q,)."""
    B, T, K = x.shape
    dim_q = w_q.shape[0]
    scale = 1.0 / math.sqrt(float(K))   # torch.div(dot, sqrt(k)), k = feature dim

    # Fused projection weight with scale folded into the Q half and the biases
    # folded in as an extra contraction row.
    wq_t = jnp.asarray(w_q, jnp.float32).T * scale           # (K, dim_q)
    wk_t = jnp.asarray(w_k, jnp.float32).T                   # (K, dim_q)
    b_row = jnp.concatenate(
        [jnp.asarray(b_q, jnp.float32) * scale,
         jnp.asarray(b_k, jnp.float32)]).reshape(1, 2 * dim_q)
    w_qk = jnp.concatenate(
        [jnp.concatenate([wq_t, wk_t], axis=1), b_row], axis=0)   # (K+1, 2*dim_q)

    # Flatten x and append the ones column that picks up the bias row.
    x2d = jnp.asarray(x, jnp.float32).reshape(B * T, K)
    x2d = jnp.concatenate([x2d, jnp.ones((B * T, 1), jnp.float32)], axis=1)

    kernel = functools.partial(_self_attention_kernel, B=B, T=T, dim_q=dim_q)

    out2d = pl.pallas_call(
        kernel,
        out_shape=jax.ShapeDtypeStruct((B * T, T), jnp.float32),
        # Grid-less: whole arrays resident in VMEM, no pipeline machinery.
        in_specs=[
            pl.BlockSpec(memory_space=pltpu.MemorySpace.VMEM),   # x (flattened + ones)
            pl.BlockSpec(memory_space=pltpu.MemorySpace.VMEM),   # fused W_qk (+ bias row)
        ],
        out_specs=pl.BlockSpec(memory_space=pltpu.MemorySpace.VMEM),
    )(x2d, w_qk)

    return out2d.reshape(B, T, T)


def _reference(x, w_q, b_q, w_k, b_k):
    q = jnp.einsum("btk,qk->btq", x, w_q) + b_q
    kk = jnp.einsum("btk,qk->btq", x, w_k) + b_k
    dot = jnp.einsum("btq,bsq->bts", q, kk)
    return dot / jnp.sqrt(jnp.float32(x.shape[-1]))


if __name__ == "__main__":
    B, T, K = 2, 8, DATA_DIM   # batch=2, seq=8, feature dim = 7*7*3 = 147

    key = jax.random.PRNGKey(0)
    kx, kwq, kbq, kwk, kbk = jax.random.split(key, 5)

    # Deterministic parameter init (shapes match nn.Linear(data_dim, dim_q)):
    bound = 1.0 / math.sqrt(K)
    x = jax.random.normal(kx, (B, T, K), dtype=jnp.float32)
    w_q = jax.random.uniform(kwq, (DIM_Q, K), jnp.float32, -bound, bound)
    b_q = jax.random.uniform(kbq, (DIM_Q,), jnp.float32, -bound, bound)
    w_k = jax.random.uniform(kwk, (DIM_Q, K), jnp.float32, -bound, bound)
    b_k = jax.random.uniform(kbk, (DIM_Q,), jnp.float32, -bound, bound)

    out = self_attention(x, w_q, b_q, w_k, b_k)
    out = jax.block_until_ready(out)

    ref = _reference(x, w_q, b_q, w_k, b_k)
    assert out.shape == (B, T, T), out.shape
    assert jnp.allclose(out, ref, atol=1e-4, rtol=1e-4), "mismatch vs reference"

    print("KERNEL_OK")
</pallas_src>

<mosaic_0001>
module attributes {stable_mosaic.version = 11 : i64} {
  func.func @_self_attention_kernel(%arg0: memref<16x148xf32, #tpu.memory_space<vmem>>, %arg1: memref<148x8xf32, #tpu.memory_space<vmem>>, %arg2: memref<16x8xf32, #tpu.memory_space<vmem>>) attributes {dimension_semantics = [], scalar_prefetch = 0 : i64, scratch_operands = 0 : i64, tpu.core_type = #tpu.core_type<tc>} {
    %c0 = arith.constant 0 : index
    %c0_0 = arith.constant 0 : index
    %0 = vector.load %arg0[%c0, %c0_0] : memref<16x148xf32, #tpu.memory_space<vmem>>, vector<16x148xf32>
    %c0_1 = arith.constant 0 : index
    %c0_2 = arith.constant 0 : index
    %1 = vector.load %arg1[%c0_1, %c0_2] : memref<148x8xf32, #tpu.memory_space<vmem>>, vector<148x8xf32>
    %cst = arith.constant dense<0.000000e+00> : vector<16x8xf32>
    %2 = tpu.matmul %0, %1, %cst {dimension_numbers = #tpu.dot_dimension_numbers<[1], [0], [0], [1], [0, 0, 1, 1], [], []>} : vector<16x148xf32>, vector<148x8xf32>, vector<16x8xf32> -> vector<16x8xf32>
    %3 = vector.extract_strided_slice %2 {offsets = [0, 0], sizes = [16, 4], strides = [1, 1]} : vector<16x8xf32> to vector<16x4xf32>
    %4 = vector.extract_strided_slice %2 {offsets = [0, 4], sizes = [16, 4], strides = [1, 1]} : vector<16x8xf32> to vector<16x4xf32>
    %cst_3 = arith.constant dense<0.000000e+00> : vector<16x16xf32>
    %5 = tpu.matmul %3, %4, %cst_3 {dimension_numbers = #tpu.dot_dimension_numbers<[1], [1], [0], [0], [0, 0, 1, 0], [], []>} : vector<16x4xf32>, vector<16x4xf32>, vector<16x16xf32> -> vector<16x16xf32>
    %6 = vector.extract_strided_slice %5 {offsets = [0, 0], sizes = [8, 8], strides = [1, 1]} : vector<16x16xf32> to vector<8x8xf32>
    %c0_4 = arith.constant 0 : index
    %c0_5 = arith.constant 0 : index
    %7 = vector.load %arg2[%c0_4, %c0_5] : memref<16x8xf32, #tpu.memory_space<vmem>>, vector<8x8xf32>
    tpu.vector_store %arg2[%c0_4, %c0_5], %6 {strides = array<i32>} : memref<16x8xf32, #tpu.memory_space<vmem>>, vector<8x8xf32>,
    %8 = vector.extract_strided_slice %5 {offsets = [8, 8], sizes = [8, 8], strides = [1, 1]} : vector<16x16xf32> to vector<8x8xf32>
    %c8 = arith.constant 8 : index
    %c0_6 = arith.constant 0 : index
    %9 = vector.load %arg2[%c8, %c0_6] : memref<16x8xf32, #tpu.memory_space<vmem>>, vector<8x8xf32>
    tpu.vector_store %arg2[%c8, %c0_6], %8 {strides = array<i32>} : memref<16x8xf32, #tpu.memory_space<vmem>>, vector<8x8xf32>,
    return
  }
}

</mosaic_0001>

<bundles_post_ra>
// kernel: self_attention.1
= control target key start
LH: loop header
LB: loop body
LE: loop exit
PB: predicated region body
PF: predicated region fallthrough
CT: control target
= control target key end

     0   :  { %v280_v1 = vmov 0.0   ;;  %vm35_vm0 = vcmask 162816   ;;  %s375_s0 = inlined_call_operand.vmem [shape: f32[16,148], index: 0, kind: input, shape index: {}]   ;;  %s376_s1 = inlined_call_operand.vmem [shape: f32[148,8], index: 1, kind: input, shape index: {}]   ;;  %s377_s2 = inlined_call_operand.hbm [shape: f32[16,8], index: 2, kind: output, shape index: {}]  }
   0x1   :  { %v31_v0 = vld [vmem:[%s376_s1 + $0x78] sm:$0xff]  ;;  %46 = vmatprep.subr.mxu0 %v280_v1  ;;  %v30_v2 = vld [vmem:[%s376_s1 + $0x70] sm:$0xff]  ;;  %v29_v3 = vld [vmem:[%s376_s1 + $0x68] sm:$0xff] }
   0x2   :  { %47 = vmatpush1.msra.mxu0 %v31_v0  ;;  %v28_v4 = vld [vmem:[%s376_s1 + $0x60] sm:$0xff]  ;;  %v13_v5 = vld [vmem:[%s375_s0 + $0x8] sm:$0xff]  ;;  %v27_v6 = vld [vmem:[%s376_s1 + $0x58] sm:$0xff] }
   0x3   :  { %48 = vmatprep.subr.mxu0 %v280_v1  ;;  %235 = vmatprep.mubr.msk.f32.mxu0 %vm35_vm0, %v13_v5 }
   0x4   :  { %49 = vmatpush1.msra.mxu0 %v30_v2 }
   0x5   :  { %50 = vmatprep.subr.mxu0 %v280_v1 }
   0x6   :  { %51 = vmatpush1.msra.mxu0 %v29_v3 }
   0x7   :  { %52 = vmatprep.subr.mxu0 %v280_v1 }
   0x8   :  { %7 = vsyncpa [#allocation3], 0  ;;  %53 = vmatpush1.msra.mxu0 %v28_v4  ;;  %v26_v7 = vld [vmem:[%s376_s1 + $0x50] sm:$0xff]  ;;  %v25_v8 = vld [vmem:[%s376_s1 + $0x48] sm:$0xff]  ;;  %vm42_vm1 = vcmask 1043456   ;;  %vm127_vm2 = vcmask 31744  }
   0x9   :  { %54 = vmatprep.subr.mxu0 %v280_v1  ;;  %v24_v9 = vld [vmem:[%s376_s1 + $0x40] sm:$0xff]  ;;  %v23_v10 = vld [vmem:[%s376_s1 + $0x38] sm:$0xff]  ;;  %v22_v11 = vld [vmem:[%s376_s1 + $0x30] sm:$0xff]  ;;  %vm211_vm3 = vcmask 64512   ;;  %s283_s27 = smov [#allocation2]  }
   0xa   :  { %55 = vmatpush1.msra.mxu0 %v27_v6  ;;  %v21_v12 = vld [vmem:[%s376_s1 + $0x28] sm:$0xff]  ;;  %v20_v13 = vld [vmem:[%s376_s1 + $0x20] sm:$0xff]  ;;  %v19_v14 = vld [vmem:[%s376_s1 + $0x18] sm:$0xff]  ;;  %s223_s28 = sshll.u32 %s283_s27, 4  ;;  %s224_s28 = int_to_ptr.vmem [resolvable:$true] %s223_s28 }
   0xb   :  { %56 = vmatprep.subr.mxu0 %v280_v1  ;;  %v18_v15 = vld [vmem:[%s376_s1 + $0x10] sm:$0xff]  ;;  %v17_v16 = vld [vmem:[%s376_s1 + $0x8] sm:$0xff]  ;;  %v16_v17 = vld [vmem:[%s376_s1] sm:$0xff]  ;;  %s258_s29 = scalar_lea.vmem %s224_s28, 256  ;;  %p263_p1 = scmp.lt.s32.totalorder %s224_s28, %s224_s28 }
   0xc   :  { %57 = vmatpush1.msra.mxu0 %v26_v7  ;;  %v34_v18 = vld [vmem:[%s376_s1 + $0x90] sm:$0xf]  ;;  %v33_v19 = vld [vmem:[%s376_s1 + $0x88] sm:$0xff]  ;;  %v32_v20 = vld [vmem:[%s376_s1 + $0x80] sm:$0xff]  ;;  %s281_s1 = smov 124   ;;  %p259_p0 = scmp.ne.s32.totalorder %s224_s28, %s258_s29 }
   0xd   :  { %58 = vmatprep.subr.mxu0 %v280_v1  ;;  %v12_v21 = vld [vmem:[%s375_s0] sm:$0xff]  ;;  %v15_v22 = vld [vmem:[%s375_s0 + $0x18] sm:$0xff]  ;;  %v14_v23 = vld [vmem:[%s375_s0 + $0x10] sm:$0xff]  ;;  %s282_s0 = smov 120   ;;  %p264_p2 = scmp.lt.s32.totalorder %s258_s29, %s258_s29 }
   0xe   :  { %59 = vmatpush1.msra.mxu0 %v25_v8 }
   0xf   :  { %60 = vmatprep.subr.mxu0 %v280_v1  ;;  %p265_p3 = por %p264_p2, %p263_p1 }
  0x10   :  { %61 = vmatpush1.msra.mxu0 %v24_v9 }
  0x11   :  { %62 = vmatprep.subr.mxu0 %v280_v1  ;;  %p266_p4 = pnand %p265_p3, %p259_p0 }
  0x12   :  { %63 = vmatpush1.msra.mxu0 %v23_v10 }
  0x13   :  { %64 = vmatprep.subr.mxu0 %v280_v1 }
  0x14   :  { %65 = vmatpush1.msra.mxu0 %v22_v11 }
  0x15   :  { %66 = vmatprep.subr.mxu0 %v280_v1 }
  0x16   :  { %67 = vmatpush1.msra.mxu0 %v21_v12 }
  0x17   :  { %68 = vmatprep.subr.mxu0 %v280_v1 }
  0x18   :  { %69 = vmatpush1.msra.mxu0 %v20_v13 }
  0x19   :  { %70 = vmatprep.subr.mxu0 %v280_v1 }
  0x1a   :  { %71 = vmatpush1.msra.mxu0 %v19_v14 }
  0x1b   :  { %72 = vmatprep.subr.mxu0 %v280_v1 }
  0x1c   :  { %73 = vmatpush1.msra.mxu0 %v18_v15 }
  0x1d   :  { %74 = vmatprep.subr.mxu0 %v280_v1 }
  0x1e   :  { %75 = vmatpush1.msra.mxu0 %v17_v16 }
  0x1f   :  { %76 = vmatprep.subr.mxu0 %v280_v1 }
  0x20   :  { %77 = vmatpush1.msra.mxu0 %v16_v17 }
  0x21   :  { %104 = vmatprep.subr.mxu0 %v280_v1 }
  0x22   :  { %234 = vmatpush2.msk.msra.mxu0 %vm42_vm1, %v34_v18 }
  0x23   :  { %106 = vmatprep.subr.mxu0 %v280_v1 }
  0x24   :  { %107 = vmatpush2.msra.mxu0 %v33_v19 }
  0x25   :  { %108 = vmatprep.subr.mxu0 %v280_v1 }
  0x26   :  { %109 = vmatpush2.msra.mxu0 %v32_v20 }
  0x27   :  { %111 = vmatmul.mubr.f32.vlgmr.msra.gmra.mxu0 %v12_v21 }
  0x28   :  { %236 = vmatprep.mubr.msk.f32.mxu0 %vm35_vm0, %v15_v22 }
  0x2b   :  { %116 = vmatmul.mubr.f32.gmra.mxu0 %v14_v23 }
  0xe7   :  { %v112_v24 = vpop.f32.mrf.mxu0 }
  0xe8   :  { %249 = vmatprep.mubr.msk.f32.mxu1 %vm127_vm2, %v112_v24 }
  0xe9   :  { %v114_v25 = vpop.f32.mrf.mxu0 }
  0xeb   :  { %v117_v26 = vpop.f32.mrf.mxu0 }
  0xec   :  { %125 = vrot.lane.b32.xlu0 %v117_v26, %s281_s1 }
  0xed   :  { %v119_v27 = vpop.f32.mrf.mxu0 }
  0xf0   :  { %123 = vrot.lane.b32.xlu0 %v112_v24, %s281_s1 }
 0x15e   :  { %v126_v28 = vpop.permute.xlu0 %125 }
 0x15f   :  { %245 = vmatprep.subr.msk.mxu1 %vm127_vm2, %v126_v28 }
 0x160   :  { %246 = vmatpush3.xpose.msk.msra.mxu1 %vm127_vm2, %v126_v28 }
 0x162   :  { %v124_v29 = vpop.permute.xlu0 %123 }
 0x163   :  { %247 = vmatprep.subr.msk.mxu1 %vm127_vm2, %v124_v29 }
 0x164   :  { %248 = vmatpush3.xpose.msk.msra.mxu1 %vm127_vm2, %v124_v29 }
 0x167   :  { %250 = vmatmul.mubr.msk.f32.vlgmr.msra.gmra.mxu1 %vm127_vm2, %v117_v26 }
 0x227   :  { %v251_v30 = vpop.f32.mrf.mxu1 }
 0x228   :  { %214 = vrot.lane.b32.xlu1 %v251_v30, %s282_s0 }
 0x229   :  { %v202_v31 = vpop.f32.mrf.mxu1 }
 0x22a   :  { %212 = vst.msk [vmem:[#allocation2] sm:$0xff] %vm211_vm3, %v202_v31 }
 0x29a   :  { %v215_v32 = vpop.permute.xlu1 %214 }
 0x29b   :  { %217 = vst.msk [vmem:[#allocation2 + $0x8] sm:$0xff] %vm211_vm3, %v215_v32 }
 0x29c   :  { %269 = shalt.err (!%p266_p4)
}
 0x29d   :  { %s284_s30 = smov 128   ;;  %s285_s3 = smov 8  }
 0x29e   :  { %229 = dma.vmem_to_hbm [thread:$0]  %s224_s28, 256, %s377_s2, [#allocation3], %s284_s30, %s284_s30, %s285_s3  }
 0x29f   :  { %278 = dma.done.wait [#allocation3], 256  }
 0x2a0   :  { %279 = vsyncadd [#allocation3], 4294967040 }
 0x2a1   :  { %233 = vsyncpa [#allocation3], 1 }

</bundles_post_ra>
